<compile_context>
chip_gen: v7x
topology: tpu7x:2x2x1
jax: 0.10.0
libtpu: 0.0.40
codegen_flags: <defaults>
</compile_context>

<pallas_src>
import functools
import math

import jax
import jax.numpy as jnp
from jax import lax
from jax.experimental import pallas as pl
from jax.experimental.pallas import tpu as pltpu


def _round_up(x, m):
    return -(-x // m) * m


def _attn_agg_kernel(x_ref, isl_ref, lens_ref, emat_ref, wf_ref, bf_ref,
                     wo_ref, bo_ref, out_ref, *, num_heads, inner_pad):
    """One grid step == a block of bb batch elements."""
    bb, t, d = x_ref.shape
    ip = inner_pad
    h = num_heads
    out_w = out_ref.shape[-1]

    x = x_ref[...]                                    # (bb, t, d) bf16, pre-masked

    # ---- GlobalMaskedPooling('mean', length_scaling, sqrt) -------------------
    # x is already mask-multiplied in the wrapper; 1/sqrt(len) precomputed.
    mean_pooled = jnp.sum(x.astype(jnp.float32), axis=1) * isl_ref[...]  # (bb, d)

    # ---- fused V projection + all-head raw scores in ONE MXU matmul ----------
    x2 = x.reshape(bb * t, d)
    vs = jnp.dot(x2, wf_ref[...],
                 preferred_element_type=jnp.float32) + bf_ref[...]   # (bb*t, ip+h)
    v2 = vs[:, :ip]                                   # (bb*t, ip): 128-aligned view
    s = vs[:, ip:].reshape(bb, t, h)                  # query folded into the weight

    # ---- prefix-length mask rebuilt in-kernel (no (bb,T,1) mask buffer) ------
    tids = lax.broadcasted_iota(jnp.int32, (bb, t, h), 1)
    valid = (tids < lens_ref[...]).astype(jnp.float32)   # lens_ref: (bb, 1, h)

    # ---- softmax over tokens, deferred normalization -------------------------
    s = s - jnp.max(s, axis=1, keepdims=True)
    e = jnp.exp(s) * valid                            # (bb, t, h) unnormalized
    denom = jnp.sum(e, axis=1)                        # (bb, h)

    # Expand per-head weights to their head_dim lanes (tiny 0/1 matmul), weight
    # V, reduce over tokens, then ONE reciprocal on the EUP.
    e_exp = jnp.dot(e.reshape(bb * t, h), emat_ref[...],
                    preferred_element_type=jnp.float32)              # (bb*t, ip)
    ctx = jnp.sum((e_exp * v2).reshape(bb, t, ip), axis=1)           # (bb, ip)
    denom_exp = jnp.maximum(
        jnp.dot(denom, emat_ref[...], preferred_element_type=jnp.float32),
        1e-20)                                                       # (bb, ip)
    ctx = ctx * pl.reciprocal(denom_exp, approx=True)

    attn_pooled = jnp.dot(ctx.astype(wo_ref.dtype), wo_ref[...],
                          preferred_element_type=jnp.float32) + bo_ref[...]  # (bb, d)

    # ---- lane-padded, lane-dense output --------------------------------------
    out = jnp.concatenate([mean_pooled, attn_pooled], axis=-1)       # (bb, 2d)
    pad = out_w - 2 * d
    if pad:
        out = jnp.concatenate([out, jnp.zeros((bb, pad), out.dtype)], axis=-1)
    out_ref[...] = out


def _choose_block_b(B, T, D, inner_pad, num_heads, vmem_budget=22 << 20):
    """Pick bb so bb*T rows fill the MXU while x double-buffer + f32 projection
    intermediates fit the scoped-VMEM budget; keep >= 2 grid blocks (v7x)."""
    if B <= 8:
        return B
    d_pad = _round_up(D, 128)
    n_pad = _round_up(inner_pad + num_heads, 128)
    per_row = T * (2 * 2 * d_pad      # double-buffered bf16 x block
                   + 4 * d_pad        # f32 copy of x for the pooling reduce
                   + 2 * 4 * n_pad)   # f32 fused projection result + one temp
    bb = max(8, (int(vmem_budget) // max(per_row, 1)) // 8 * 8)
    bb = min(bb, max(8, (-(-B // 2)) // 8 * 8))     # >= 2 blocks: both v7x TCs
    a = 128 // math.gcd(T, 128)                     # prefer bb*T % 128 == 0
    if bb >= a:
        bb = bb // a * a
    return bb


def attention_aggregation(x, pad_mask, params, *, num_heads, block_b=None):
    """x: (B, T, D) f32; pad_mask: (B, T) {0,1} (suffix padding). -> (B, 2D) f32."""
    B, T, D = x.shape
    inner = params["wk"].shape[1]
    head_dim = inner // num_heads
    scale = 1.0 / math.sqrt(head_dim)
    f32 = jnp.float32
    inner_pad = _round_up(max(inner, 128), 128)      # lane-align the V slice

    # ---- batch-invariant precompute (hoisted out of the kernel) --------------
    q = (params["query"] @ params["wq"] + params["bq"]) * scale       # (1, I)
    head_eye = jnp.eye(num_heads, dtype=f32)
    # Block-diagonal scaled query: qm[h*hd + j, h'] = q[h*hd + j] * (h == h')
    qm = (q.reshape(num_heads, head_dim)[:, :, None] * head_eye[:, None, :]
          ).reshape(inner, num_heads)                                 # (I, H)
    # Fold the constant query into the K projection -> K never materialized.
    wkq = params["wk"] @ qm                                           # (D, H)
    # (The K bias adds a per-head constant to every token's score; softmax is
    #  shift-invariant over tokens, so it is dropped.)

    # Head -> head_dim-lane expansion matrix, padded to the aligned inner dim.
    e_mat = (head_eye[:, :, None] * jnp.ones((1, 1, head_dim), f32)
             ).reshape(num_heads, inner)
    e_mat = jnp.pad(e_mat, ((0, 0), (0, inner_pad - inner)))          # (H, I_p)

    wv_p = jnp.pad(params["wv"], ((0, 0), (0, inner_pad - inner)))    # (D, I_p)
    bv_p = jnp.pad(params["bv"], ((0, 0), (0, inner_pad - inner)))    # (1, I_p)
    w_fused = jnp.concatenate([wv_p, wkq], axis=1).astype(jnp.bfloat16)  # (D, I_p+H)
    b_fused = jnp.concatenate([bv_p, jnp.zeros((1, num_heads), f32)], axis=1)
    wo_p = jnp.pad(params["wo"], ((0, inner_pad - inner), (0, 0))
                   ).astype(jnp.bfloat16)                             # (I_p, D)
    bo = params["bo"].astype(f32)                                     # (1, D)

    # ---- per-row stats; mask folded into x (fused with the bf16 cast) --------
    m = pad_mask.astype(f32)
    lens = jnp.sum(m, axis=-1, keepdims=True)                         # (B, 1)
    isl = lax.rsqrt(jnp.maximum(lens, 1.0))                           # (B, 1)
    lens_h = jnp.broadcast_to(lens.astype(jnp.int32)[:, :, None],
                              (B, 1, num_heads))                      # (B, 1, H)
    xm = (x * m[..., None]).astype(jnp.bfloat16)                      # (B, T, D)

    # ---- batch blocking -------------------------------------------------------
    if block_b is None:
        bb = _choose_block_b(B, T, D, inner_pad, num_heads)
    else:
        bb = max(1, min(int(block_b), B))
    if B > 8:
        bb = max(8, bb // 8 * 8)                    # sublane-aligned block batch
    n_blocks = -(-B // bb)
    Bp = n_blocks * bb
    if Bp > B:
        xm = jnp.pad(xm, ((0, Bp - B), (0, 0), (0, 0)))
        isl = jnp.pad(isl, ((0, Bp - B), (0, 0)))
        lens_h = jnp.pad(lens_h, ((0, Bp - B), (0, 0), (0, 0)))

    out_w = max(128, _round_up(2 * D, 128))                           # lane-dense

    kernel = functools.partial(_attn_agg_kernel, num_heads=num_heads,
                               inner_pad=inner_pad)

    flops = (2 * Bp * T * D * (inner_pad + num_heads)     # fused V/score matmul
             + 2 * Bp * T * num_heads * inner_pad         # head expansion matmul
             + 2 * Bp * inner_pad * D)                    # output projection
    bytes_accessed = (xm.size * 2 + isl.size * 4 + lens_h.size * 4
                      + e_mat.size * 4 + w_fused.size * 2 + b_fused.size * 4
                      + wo_p.size * 2 + bo.size * 4 + Bp * out_w * 4)

    def run(optimized):
        def const_spec(shape):
            n = len(shape)
            idx = lambda *a, _n=n: (0,) * _n
            if optimized:
                # constant-index weights: no need to double-buffer them
                return pl.BlockSpec(shape, idx, pipeline_mode=pl.Buffered(1))
            return pl.BlockSpec(shape, idx)

        extra = {}
        if optimized:
            extra["cost_estimate"] = pl.CostEstimate(
                flops=int(flops),
                transcendentals=int(Bp * T * num_heads),
                bytes_accessed=int(bytes_accessed))
        cparams = pltpu.CompilerParams(
            dimension_semantics=("parallel",),
            vmem_limit_bytes=(40 * 1024 * 1024) if optimized else None)

        return pl.pallas_call(
            kernel,
            out_shape=jax.ShapeDtypeStruct((Bp, out_w), jnp.float32),
            grid=(n_blocks,),
            in_specs=[
                pl.BlockSpec((bb, T, D), lambda i: (i, 0, 0)),     # x (bf16, masked)
                pl.BlockSpec((bb, 1), lambda i: (i, 0)),           # 1/sqrt(len)
                pl.BlockSpec((bb, 1, num_heads), lambda i: (i, 0, 0)),  # lengths
                const_spec((num_heads, inner_pad)),                # head expansion
                const_spec((D, inner_pad + num_heads)),            # [Wv | Wk@q]
                const_spec((1, inner_pad + num_heads)),            # fused bias
                const_spec((inner_pad, D)),                        # Wo
                const_spec((1, D)),                                # bo
            ],
            out_specs=pl.BlockSpec((bb, out_w), lambda i: (i, 0)),
            compiler_params=cparams,
            **extra,
        )(xm, isl, lens_h, e_mat, w_fused, b_fused, wo_p, bo)

    try:
        out = run(optimized=True)
    except Exception:
        # Conservative envelope (default buffering, no vmem/cost hints) if the
        # optimized call is rejected by this jax/libtpu version.
        out = run(optimized=False)

    return out[:B, :2 * D]                                            # (B, 2D)


def attention_aggregation_ref(x, pad_mask, params, *, num_heads):
    """Pure-JAX f32 reference for correctness checking."""
    B, T, D = x.shape
    m = pad_mask.astype(jnp.float32)
    length = jnp.maximum(m.sum(-1, keepdims=True), 1.0)               # (B, 1)
    mean_pooled = (x * m[..., None]).sum(1) / length * jnp.sqrt(length)

    q = params["query"] @ params["wq"] + params["bq"]                  # (1, I)
    k = jnp.einsum("btd,de->bte", x, params["wk"]) + params["bk"]
    v = jnp.einsum("btd,de->bte", x, params["wv"]) + params["bv"]
    Hd = q.shape[-1]
    hd = Hd // num_heads
    qh = q.reshape(1, num_heads, hd)
    kh = k.reshape(B, T, num_heads, hd)
    vh = v.reshape(B, T, num_heads, hd)
    s = jnp.einsum("qhd,bthd->bht", qh, kh) / jnp.sqrt(hd)
    s = jnp.where(m[:, None, :] > 0, s, -1e30)
    p = jax.nn.softmax(s, axis=-1)
    ctx = jnp.einsum("bht,bthd->bhd", p, vh).reshape(B, Hd)
    attn_pooled = ctx @ params["wo"] + params["bo"]
    return jnp.concatenate([mean_pooled, attn_pooled], axis=-1)


def init_params(key, model_dim, inner_dim):
    ks = jax.random.split(key, 10)

    def lin_w(k, fan_in, shape):
        bound = 1.0 / (fan_in ** 0.5)
        return jax.random.uniform(k, shape, jnp.float32, -bound, bound)

    return {
        "query": jax.random.normal(ks[0], (1, model_dim), jnp.float32),
        "wq": lin_w(ks[1], model_dim, (model_dim, inner_dim)),
        "bq": lin_w(ks[2], model_dim, (1, inner_dim)),
        "wk": lin_w(ks[3], model_dim, (model_dim, inner_dim)),
        "bk": lin_w(ks[4], model_dim, (1, inner_dim)),
        "wv": lin_w(ks[5], model_dim, (model_dim, inner_dim)),
        "bv": lin_w(ks[6], model_dim, (1, inner_dim)),
        "wo": lin_w(ks[7], inner_dim, (inner_dim, model_dim)),
        "bo": lin_w(ks[8], inner_dim, (1, model_dim)),
    }


if __name__ == "__main__":
    B, T, D = 2, 8, 32
    NUM_HEADS = 4
    INNER_DIM = D  # default inner_dim = model_dim

    key = jax.random.PRNGKey(0)
    k_param, k_x = jax.random.split(key)
    params = init_params(k_param, D, INNER_DIM)

    x = jax.random.normal(k_x, (B, T, D), jnp.float32)          # batch['backbone']
    lengths = jnp.array([T, 5])
    pad_mask = (jnp.arange(T)[None, :] < lengths[:, None]).astype(jnp.float32)

    out = attention_aggregation(x, pad_mask, params, num_heads=NUM_HEADS)
    out = jax.block_until_ready(out)

    ref = attention_aggregation_ref(x, pad_mask, params, num_heads=NUM_HEADS)
    assert out.shape == (B, 2 * D), out.shape
    # bf16 matmul operands (f32 accumulation) -> relaxed tolerance vs f32 ref.
    assert jnp.allclose(out, ref, rtol=3e-2, atol=3e-2), (
        float(jnp.max(jnp.abs(out - ref))))

    print("KERNEL_OK")
</pallas_src>

<mosaic_0001>
module attributes {stable_mosaic.version = 11 : i64} {
  func.func @_attn_agg_kernel(%arg0: i32, %arg1: memref<2x8x32xbf16, #tpu.memory_space<vmem>>, %arg2: memref<2x1xf32, #tpu.memory_space<vmem>>, %arg3: memref<2x1x4xi32, #tpu.memory_space<vmem>>, %arg4: memref<4x128xf32, #tpu.memory_space<vmem>>, %arg5: memref<32x132xbf16, #tpu.memory_space<vmem>>, %arg6: memref<1x132xf32, #tpu.memory_space<vmem>>, %arg7: memref<128x32xbf16, #tpu.memory_space<vmem>>, %arg8: memref<1x32xf32, #tpu.memory_space<vmem>>, %arg9: memref<2x128xf32, #tpu.memory_space<vmem>>) attributes {dimension_semantics = [#tpu.dimension_semantics<parallel>], iteration_bounds = array<i64: 1>, scalar_prefetch = 0 : i64, scratch_operands = 0 : i64, tpu.core_type = #tpu.core_type<tc>, window_params = [{transform_indices = @transform_0, window_bounds = array<i64: 2, 8, 32>}, {transform_indices = @transform_1, window_bounds = array<i64: 2, 1>}, {transform_indices = @transform_2, window_bounds = array<i64: 2, 1, 4>}, {pipeline_mode = #tpu.pipeline_mode<synchronous>, transform_indices = @transform_3, window_bounds = array<i64: 4, 128>}, {pipeline_mode = #tpu.pipeline_mode<synchronous>, transform_indices = @transform_4, window_bounds = array<i64: 32, 132>}, {pipeline_mode = #tpu.pipeline_mode<synchronous>, transform_indices = @transform_5, window_bounds = array<i64: 1, 132>}, {pipeline_mode = #tpu.pipeline_mode<synchronous>, transform_indices = @transform_6, window_bounds = array<i64: 128, 32>}, {pipeline_mode = #tpu.pipeline_mode<synchronous>, transform_indices = @transform_7, window_bounds = array<i64: 1, 32>}, {transform_indices = @transform_8, window_bounds = array<i64: 2, 128>}]} {
    %c0 = arith.constant 0 : index
    %c0_0 = arith.constant 0 : index
    %c0_1 = arith.constant 0 : index
    %0 = vector.load %arg1[%c0, %c0_0, %c0_1] : memref<2x8x32xbf16, #tpu.memory_space<vmem>>, vector<2x8x32xbf16>
    %1 = arith.extf %0 : vector<2x8x32xbf16> to vector<2x8x32xf32>
    %cst = arith.constant dense<0.000000e+00> : vector<2x32xf32>
    %2 = vector.multi_reduction <add>, %1, %cst [1] : vector<2x8x32xf32> to vector<2x32xf32>
    %c0_2 = arith.constant 0 : index
    %c0_3 = arith.constant 0 : index
    %3 = vector.load %arg2[%c0_2, %c0_3] : memref<2x1xf32, #tpu.memory_space<vmem>>, vector<2x1xf32>
    %4 = vector.broadcast %3 : vector<2x1xf32> to vector<2x32xf32>
    %5 = arith.mulf %2, %4 : vector<2x32xf32>
    %6 = vector.shape_cast %0 : vector<2x8x32xbf16> to vector<16x32xbf16>
    %c0_4 = arith.constant 0 : index
    %c0_5 = arith.constant 0 : index
    %7 = vector.load %arg5[%c0_4, %c0_5] : memref<32x132xbf16, #tpu.memory_space<vmem>>, vector<32x132xbf16>
    %cst_6 = arith.constant dense<0.000000e+00> : vector<16x132xf32>
    %8 = tpu.matmul %6, %7, %cst_6 {dimension_numbers = #tpu.dot_dimension_numbers<[1], [0], [0], [1], [0, 0, 1, 1], [], []>} : vector<16x32xbf16>, vector<32x132xbf16>, vector<16x132xf32> -> vector<16x132xf32>
    %c0_7 = arith.constant 0 : index
    %c0_8 = arith.constant 0 : index
    %9 = vector.load %arg6[%c0_7, %c0_8] : memref<1x132xf32, #tpu.memory_space<vmem>>, vector<1x132xf32>
    %10 = vector.broadcast %9 : vector<1x132xf32> to vector<16x132xf32>
    %11 = arith.addf %8, %10 : vector<16x132xf32>
    %12 = vector.extract_strided_slice %11 {offsets = [0, 0], sizes = [16, 128], strides = [1, 1]} : vector<16x132xf32> to vector<16x128xf32>
    %13 = vector.extract_strided_slice %11 {offsets = [0, 128], sizes = [16, 4], strides = [1, 1]} : vector<16x132xf32> to vector<16x4xf32>
    %14 = vector.shape_cast %13 : vector<16x4xf32> to vector<2x8x4xf32>
    %15 = tpu.iota {dimensions = array<i32: 1>} : vector<2x8x4xi32>
    %c0_9 = arith.constant 0 : index
    %c0_10 = arith.constant 0 : index
    %c0_11 = arith.constant 0 : index
    %16 = vector.load %arg3[%c0_9, %c0_10, %c0_11] : memref<2x1x4xi32, #tpu.memory_space<vmem>>, vector<2x1x4xi32>
    %17 = vector.broadcast %16 : vector<2x1x4xi32> to vector<2x8x4xi32>
    %18 = arith.cmpi slt, %15, %17 : vector<2x8x4xi32>
    %19 = arith.extui %18 : vector<2x8x4xi1> to vector<2x8x4xi32>
    %20 = arith.sitofp %19 : vector<2x8x4xi32> to vector<2x8x4xf32>
    %cst_12 = arith.constant dense<0xFF800000> : vector<2x4xf32>
    %21 = vector.multi_reduction <maximumf>, %14, %cst_12 [1] : vector<2x8x4xf32> to vector<2x4xf32>
    %22 = vector.shape_cast %21 : vector<2x4xf32> to vector<2x1x4xf32>
    %23 = vector.broadcast %22 : vector<2x1x4xf32> to vector<2x8x4xf32>
    %24 = arith.subf %14, %23 : vector<2x8x4xf32>
    %25 = math.exp %24 : vector<2x8x4xf32>
    %26 = arith.mulf %25, %20 : vector<2x8x4xf32>
    %cst_13 = arith.constant dense<0.000000e+00> : vector<2x4xf32>
    %27 = vector.multi_reduction <add>, %26, %cst_13 [1] : vector<2x8x4xf32> to vector<2x4xf32>
    %28 = vector.shape_cast %26 : vector<2x8x4xf32> to vector<16x4xf32>
    %c0_14 = arith.constant 0 : index
    %c0_15 = arith.constant 0 : index
    %29 = vector.load %arg4[%c0_14, %c0_15] : memref<4x128xf32, #tpu.memory_space<vmem>>, vector<4x128xf32>
    %cst_16 = arith.constant dense<0.000000e+00> : vector<16x128xf32>
    %30 = tpu.matmul %28, %29, %cst_16 {dimension_numbers = #tpu.dot_dimension_numbers<[1], [0], [0], [1], [0, 0, 1, 1], [], []>} : vector<16x4xf32>, vector<4x128xf32>, vector<16x128xf32> -> vector<16x128xf32>
    %31 = arith.mulf %30, %12 : vector<16x128xf32>
    %32 = vector.shape_cast %31 : vector<16x128xf32> to vector<2x8x128xf32>
    %cst_17 = arith.constant dense<0.000000e+00> : vector<2x128xf32>
    %33 = vector.multi_reduction <add>, %32, %cst_17 [1] : vector<2x8x128xf32> to vector<2x128xf32>
    %c0_18 = arith.constant 0 : index
    %c0_19 = arith.constant 0 : index
    %34 = vector.load %arg4[%c0_18, %c0_19] : memref<4x128xf32, #tpu.memory_space<vmem>>, vector<4x128xf32>
    %cst_20 = arith.constant dense<0.000000e+00> : vector<2x128xf32>
    %35 = tpu.matmul %27, %34, %cst_20 {dimension_numbers = #tpu.dot_dimension_numbers<[1], [0], [0], [1], [0, 0, 1, 1], [], []>} : vector<2x4xf32>, vector<4x128xf32>, vector<2x128xf32> -> vector<2x128xf32>
    %cst_21 = arith.constant 9.99999968E-21 : f32
    %36 = vector.broadcast %cst_21 : f32 to vector<2x128xf32>
    %37 = arith.maximumf %35, %36 : vector<2x128xf32>
    %38 = tpu.reciprocal %37 {approx = true} : vector<2x128xf32> -> vector<2x128xf32>
    %39 = arith.mulf %33, %38 : vector<2x128xf32>
    %40 = arith.truncf %39 : vector<2x128xf32> to vector<2x128xbf16>
    %c0_22 = arith.constant 0 : index
    %c0_23 = arith.constant 0 : index
    %41 = vector.load %arg7[%c0_22, %c0_23] : memref<128x32xbf16, #tpu.memory_space<vmem>>, vector<128x32xbf16>
    %cst_24 = arith.constant dense<0.000000e+00> : vector<2x32xf32>
    %42 = tpu.matmul %40, %41, %cst_24 {dimension_numbers = #tpu.dot_dimension_numbers<[1], [0], [0], [1], [0, 0, 1, 1], [], []>} : vector<2x128xbf16>, vector<128x32xbf16>, vector<2x32xf32> -> vector<2x32xf32>
    %c0_25 = arith.constant 0 : index
    %c0_26 = arith.constant 0 : index
    %43 = vector.load %arg8[%c0_25, %c0_26] : memref<1x32xf32, #tpu.memory_space<vmem>>, vector<1x32xf32>
    %44 = vector.broadcast %43 : vector<1x32xf32> to vector<2x32xf32>
    %45 = arith.addf %42, %44 : vector<2x32xf32>
    %46 = tpu.concatenate %5, %45 in 1 : vector<2x32xf32>, vector<2x32xf32> -> vector<2x64xf32>
    %cst_27 = arith.constant 0.000000e+00 : f32
    %47 = vector.broadcast %cst_27 : f32 to vector<2x64xf32>
    %48 = tpu.concatenate %46, %47 in 1 : vector<2x64xf32>, vector<2x64xf32> -> vector<2x128xf32>
    %c0_28 = arith.constant 0 : index
    %c0_29 = arith.constant 0 : index
    %49 = vector.load %arg9[%c0_28, %c0_29] : memref<2x128xf32, #tpu.memory_space<vmem>>, vector<2x128xf32>
    tpu.vector_store %arg9[%c0_28, %c0_29], %48 {strides = array<i32>} : memref<2x128xf32, #tpu.memory_space<vmem>>, vector<2x128xf32>,
    return
  }
  func.func @transform_0(%arg0: i32) -> (i32, i32, i32) {
    %c0_i32 = arith.constant 0 : i32
    %c0_i32_0 = arith.constant 0 : i32
    %c0_i32_1 = arith.constant 0 : i32
    return %arg0, %c0_i32, %c0_i32_0 : i32, i32, i32
  }
  func.func @transform_1(%arg0: i32) -> (i32, i32) {
    %c0_i32 = arith.constant 0 : i32
    %c0_i32_0 = arith.constant 0 : i32
    return %arg0, %c0_i32 : i32, i32
  }
  func.func @transform_2(%arg0: i32) -> (i32, i32, i32) {
    %c0_i32 = arith.constant 0 : i32
    %c0_i32_0 = arith.constant 0 : i32
    %c0_i32_1 = arith.constant 0 : i32
    return %arg0, %c0_i32, %c0_i32_0 : i32, i32, i32
  }
  func.func @transform_3(%arg0: i32) -> (i32, i32) {
    %c0_i32 = arith.constant 0 : i32
    %c0_i32_0 = arith.constant 0 : i32
    %c0_i32_1 = arith.constant 0 : i32
    return %c0_i32, %c0_i32_0 : i32, i32
  }
  func.func @transform_4(%arg0: i32) -> (i32, i32) {
    %c0_i32 = arith.constant 0 : i32
    %c0_i32_0 = arith.constant 0 : i32
    %c0_i32_1 = arith.constant 0 : i32
    return %c0_i32, %c0_i32_0 : i32, i32
  }
  func.func @transform_5(%arg0: i32) -> (i32, i32) {
    %c0_i32 = arith.constant 0 : i32
    %c0_i32_0 = arith.constant 0 : i32
    %c0_i32_1 = arith.constant 0 : i32
    return %c0_i32, %c0_i32_0 : i32, i32
  }
  func.func @transform_6(%arg0: i32) -> (i32, i32) {
    %c0_i32 = arith.constant 0 : i32
    %c0_i32_0 = arith.constant 0 : i32
    %c0_i32_1 = arith.constant 0 : i32
    return %c0_i32, %c0_i32_0 : i32, i32
  }
  func.func @transform_7(%arg0: i32) -> (i32, i32) {
    %c0_i32 = arith.constant 0 : i32
    %c0_i32_0 = arith.constant 0 : i32
    %c0_i32_1 = arith.constant 0 : i32
    return %c0_i32, %c0_i32_0 : i32, i32
  }
  func.func @transform_8(%arg0: i32) -> (i32, i32) {
    %c0_i32 = arith.constant 0 : i32
    %c0_i32_0 = arith.constant 0 : i32
    return %arg0, %c0_i32 : i32, i32
  }
}

module attributes {stable_mosaic.version = 11 : i64} {
  func.func @_attn_agg_kernel(%arg0: i32, %arg1: memref<2x8x32xbf16, #tpu.memory_space<vmem>>, %arg2: memref<2x1xf32, #tpu.memory_space<vmem>>, %arg3: memref<2x1x4xi32, #tpu.memory_space<vmem>>, %arg4: memref<4x128xf32, #tpu.memory_space<vmem>>, %arg5: memref<32x132xbf16, #tpu.memory_space<vmem>>, %arg6: memref<1x132xf32, #tpu.memory_space<vmem>>, %arg7: memref<128x32xbf16, #tpu.memory_space<vmem>>, %arg8: memref<1x32xf32, #tpu.memory_space<vmem>>, %arg9: memref<2x128xf32, #tpu.memory_space<vmem>>) attributes {dimension_semantics = [#tpu.dimension_semantics<parallel>], iteration_bounds = array<i64: 1>, scalar_prefetch = 0 : i64, scratch_operands = 0 : i64, tpu.core_type = #tpu.core_type<tc>, window_params = [{transform_indices = @transform_0, window_bounds = array<i64: 2, 8, 32>}, {transform_indices = @transform_1, window_bounds = array<i64: 2, 1>}, {transform_indices = @transform_2, window_bounds = array<i64: 2, 1, 4>}, {pipeline_mode = #tpu.pipeline_mode<synchronous>, transform_indices = @transform_3, window_bounds = array<i64: 4, 128>}, {pipeline_mode = #tpu.pipeline_mode<synchronous>, transform_indices = @transform_4, window_bounds = array<i64: 32, 132>}, {pipeline_mode = #tpu.pipeline_mode<synchronous>, transform_indices = @transform_5, window_bounds = array<i64: 1, 132>}, {pipeline_mode = #tpu.pipeline_mode<synchronous>, transform_indices = @transform_6, window_bounds = array<i64: 128, 32>}, {pipeline_mode = #tpu.pipeline_mode<synchronous>, transform_indices = @transform_7, window_bounds = array<i64: 1, 32>}, {transform_indices = @transform_8, window_bounds = array<i64: 2, 128>}]} {
    %c0 = arith.constant 0 : index
    %c0_0 = arith.constant 0 : index
    %c0_1 = arith.constant 0 : index
    %0 = vector.load %arg1[%c0, %c0_0, %c0_1] : memref<2x8x32xbf16, #tpu.memory_space<vmem>>, vector<2x8x32xbf16>
    %1 = arith.extf %0 : vector<2x8x32xbf16> to vector<2x8x32xf32>
    %cst = arith.constant dense<0.000000e+00> : vector<2x32xf32>
    %2 = vector.multi_reduction <add>, %1, %cst [1] : vector<2x8x32xf32> to vector<2x32xf32>
    %c0_2 = arith.constant 0 : index
    %c0_3 = arith.constant 0 : index
    %3 = vector.load %arg2[%c0_2, %c0_3] : memref<2x1xf32, #tpu.memory_space<vmem>>, vector<2x1xf32>
    %4 = vector.broadcast %3 : vector<2x1xf32> to vector<2x32xf32>
    %5 = arith.mulf %2, %4 : vector<2x32xf32>
    %6 = vector.shape_cast %0 : vector<2x8x32xbf16> to vector<16x32xbf16>
    %c0_4 = arith.constant 0 : index
    %c0_5 = arith.constant 0 : index
    %7 = vector.load %arg5[%c0_4, %c0_5] : memref<32x132xbf16, #tpu.memory_space<vmem>>, vector<32x132xbf16>
    %cst_6 = arith.constant dense<0.000000e+00> : vector<16x132xf32>
    %8 = tpu.matmul %6, %7, %cst_6 {dimension_numbers = #tpu.dot_dimension_numbers<[1], [0], [0], [1], [0, 0, 1, 1], [], []>} : vector<16x32xbf16>, vector<32x132xbf16>, vector<16x132xf32> -> vector<16x132xf32>
    %c0_7 = arith.constant 0 : index
    %c0_8 = arith.constant 0 : index
    %9 = vector.load %arg6[%c0_7, %c0_8] : memref<1x132xf32, #tpu.memory_space<vmem>>, vector<1x132xf32>
    %10 = vector.broadcast %9 : vector<1x132xf32> to vector<16x132xf32>
    %11 = arith.addf %8, %10 : vector<16x132xf32>
    %12 = vector.extract_strided_slice %11 {offsets = [0, 0], sizes = [16, 128], strides = [1, 1]} : vector<16x132xf32> to vector<16x128xf32>
    %13 = vector.extract_strided_slice %11 {offsets = [0, 128], sizes = [16, 4], strides = [1, 1]} : vector<16x132xf32> to vector<16x4xf32>
    %14 = vector.shape_cast %13 : vector<16x4xf32> to vector<2x8x4xf32>
    %15 = tpu.iota {dimensions = array<i32: 1>} : vector<2x8x4xi32>
    %c0_9 = arith.constant 0 : index
    %c0_10 = arith.constant 0 : index
    %c0_11 = arith.constant 0 : index
    %16 = vector.load %arg3[%c0_9, %c0_10, %c0_11] : memref<2x1x4xi32, #tpu.memory_space<vmem>>, vector<2x1x4xi32>
    %17 = vector.broadcast %16 : vector<2x1x4xi32> to vector<2x8x4xi32>
    %18 = arith.cmpi slt, %15, %17 : vector<2x8x4xi32>
    %19 = arith.extui %18 : vector<2x8x4xi1> to vector<2x8x4xi32>
    %20 = arith.sitofp %19 : vector<2x8x4xi32> to vector<2x8x4xf32>
    %cst_12 = arith.constant dense<0xFF800000> : vector<2x4xf32>
    %21 = vector.multi_reduction <maximumf>, %14, %cst_12 [1] : vector<2x8x4xf32> to vector<2x4xf32>
    %22 = vector.shape_cast %21 : vector<2x4xf32> to vector<2x1x4xf32>
    %23 = vector.broadcast %22 : vector<2x1x4xf32> to vector<2x8x4xf32>
    %24 = arith.subf %14, %23 : vector<2x8x4xf32>
    %25 = math.exp %24 : vector<2x8x4xf32>
    %26 = arith.mulf %25, %20 : vector<2x8x4xf32>
    %cst_13 = arith.constant dense<0.000000e+00> : vector<2x4xf32>
    %27 = vector.multi_reduction <add>, %26, %cst_13 [1] : vector<2x8x4xf32> to vector<2x4xf32>
    %28 = vector.shape_cast %26 : vector<2x8x4xf32> to vector<16x4xf32>
    %c0_14 = arith.constant 0 : index
    %c0_15 = arith.constant 0 : index
    %29 = vector.load %arg4[%c0_14, %c0_15] : memref<4x128xf32, #tpu.memory_space<vmem>>, vector<4x128xf32>
    %cst_16 = arith.constant dense<0.000000e+00> : vector<16x128xf32>
    %30 = tpu.matmul %28, %29, %cst_16 {dimension_numbers = #tpu.dot_dimension_numbers<[1], [0], [0], [1], [0, 0, 1, 1], [], []>} : vector<16x4xf32>, vector<4x128xf32>, vector<16x128xf32> -> vector<16x128xf32>
    %31 = arith.mulf %30, %12 : vector<16x128xf32>
    %32 = vector.shape_cast %31 : vector<16x128xf32> to vector<2x8x128xf32>
    %cst_17 = arith.constant dense<0.000000e+00> : vector<2x128xf32>
    %33 = vector.multi_reduction <add>, %32, %cst_17 [1] : vector<2x8x128xf32> to vector<2x128xf32>
    %c0_18 = arith.constant 0 : index
    %c0_19 = arith.constant 0 : index
    %34 = vector.load %arg4[%c0_18, %c0_19] : memref<4x128xf32, #tpu.memory_space<vmem>>, vector<4x128xf32>
    %cst_20 = arith.constant dense<0.000000e+00> : vector<2x128xf32>
    %35 = tpu.matmul %27, %34, %cst_20 {dimension_numbers = #tpu.dot_dimension_numbers<[1], [0], [0], [1], [0, 0, 1, 1], [], []>} : vector<2x4xf32>, vector<4x128xf32>, vector<2x128xf32> -> vector<2x128xf32>
    %cst_21 = arith.constant 9.99999968E-21 : f32
    %36 = vector.broadcast %cst_21 : f32 to vector<2x128xf32>
    %37 = arith.maximumf %35, %36 : vector<2x128xf32>
    %38 = tpu.reciprocal %37 {approx = true} : vector<2x128xf32> -> vector<2x128xf32>
    %39 = arith.mulf %33, %38 : vector<2x128xf32>
    %40 = arith.truncf %39 : vector<2x128xf32> to vector<2x128xbf16>
    %c0_22 = arith.constant 0 : index
    %c0_23 = arith.constant 0 : index
    %41 = vector.load %arg7[%c0_22, %c0_23] : memref<128x32xbf16, #tpu.memory_space<vmem>>, vector<128x32xbf16>
    %cst_24 = arith.constant dense<0.000000e+00> : vector<2x32xf32>
    %42 = tpu.matmul %40, %41, %cst_24 {dimension_numbers = #tpu.dot_dimension_numbers<[1], [0], [0], [1], [0, 0, 1, 1], [], []>} : vector<2x128xbf16>, vector<128x32xbf16>, vector<2x32xf32> -> vector<2x32xf32>
    %c0_25 = arith.constant 0 : index
    %c0_26 = arith.constant 0 : index
    %43 = vector.load %arg8[%c0_25, %c0_26] : memref<1x32xf32, #tpu.memory_space<vmem>>, vector<1x32xf32>
    %44 = vector.broadcast %43 : vector<1x32xf32> to vector<2x32xf32>
    %45 = arith.addf %42, %44 : vector<2x32xf32>
    %46 = tpu.concatenate %5, %45 in 1 : vector<2x32xf32>, vector<2x32xf32> -> vector<2x64xf32>
    %cst_27 = arith.constant 0.000000e+00 : f32
    %47 = vector.broadcast %cst_27 : f32 to vector<2x64xf32>
    %48 = tpu.concatenate %46, %47 in 1 : vector<2x64xf32>, vector<2x64xf32> -> vector<2x128xf32>
    %c0_28 = arith.constant 0 : index
    %c0_29 = arith.constant 0 : index
    %49 = vector.load %arg9[%c0_28, %c0_29] : memref<2x128xf32, #tpu.memory_space<vmem>>, vector<2x128xf32>
    tpu.vector_store %arg9[%c0_28, %c0_29], %48 {strides = array<i32>} : memref<2x128xf32, #tpu.memory_space<vmem>>, vector<2x128xf32>,
    return
  }
  func.func @transform_0(%arg0: i32) -> (i32, i32, i32) {
    %c0_i32 = arith.constant 0 : i32
    %c0_i32_0 = arith.constant 0 : i32
    %c0_i32_1 = arith.constant 0 : i32
    return %arg0, %c0_i32, %c0_i32_0 : i32, i32, i32
  }
  func.func @transform_1(%arg0: i32) -> (i32, i32) {
    %c0_i32 = arith.constant 0 : i32
    %c0_i32_0 = arith.constant 0 : i32
    return %arg0, %c0_i32 : i32, i32
  }
  func.func @transform_2(%arg0: i32) -> (i32, i32, i32) {
    %c0_i32 = arith.constant 0 : i32
    %c0_i32_0 = arith.constant 0 : i32
    %c0_i32_1 = arith.constant 0 : i32
    return %arg0, %c0_i32, %c0_i32_0 : i32, i32, i32
  }
  func.func @transform_3(%arg0: i32) -> (i32, i32) {
    %c0_i32 = arith.constant 0 : i32
    %c0_i32_0 = arith.constant 0 : i32
    %c0_i32_1 = arith.constant 0 : i32
    return %c0_i32, %c0_i32_0 : i32, i32
  }
  func.func @transform_4(%arg0: i32) -> (i32, i32) {
    %c0_i32 = arith.constant 0 : i32
    %c0_i32_0 = arith.constant 0 : i32
    %c0_i32_1 = arith.constant 0 : i32
    return %c0_i32, %c0_i32_0 : i32, i32
  }
  func.func @transform_5(%arg0: i32) -> (i32, i32) {
    %c0_i32 = arith.constant 0 : i32
    %c0_i32_0 = arith.constant 0 : i32
    %c0_i32_1 = arith.constant 0 : i32
    return %c0_i32, %c0_i32_0 : i32, i32
  }
  func.func @transform_6(%arg0: i32) -> (i32, i32) {
    %c0_i32 = arith.constant 0 : i32
    %c0_i32_0 = arith.constant 0 : i32
    %c0_i32_1 = arith.constant 0 : i32
    return %c0_i32, %c0_i32_0 : i32, i32
  }
  func.func @transform_7(%arg0: i32) -> (i32, i32) {
    %c0_i32 = arith.constant 0 : i32
    %c0_i32_0 = arith.constant 0 : i32
    %c0_i32_1 = arith.constant 0 : i32
    return %c0_i32, %c0_i32_0 : i32, i32
  }
  func.func @transform_8(%arg0: i32) -> (i32, i32) {
    %c0_i32 = arith.constant 0 : i32
    %c0_i32_0 = arith.constant 0 : i32
    return %arg0, %c0_i32 : i32, i32
  }
}

</mosaic_0001>

<bundles_post_ra>
// kernel: tpu_custom_call.1
= control target key start
LH: loop header
LB: loop body
LE: loop exit
PB: predicated region body
PF: predicated region fallthrough
CT: control target
= control target key end

     0   :  { %v654_v2 = vmov 0   ;;  %vm35_vm0 = vcmask 261120   ;;  %s826_s0 = inlined_call_operand.vmem [shape: bf16[2,8,32], index: 0, kind: input, shape index: {}]   ;;  %s827_s1 = inlined_call_operand.vmem [shape: f32[2,1], index: 1, kind: input, shape index: {}]   ;;  %s828_s2 = inlined_call_operand.vmem [shape: s32[2,1,4], index: 2, kind: input, shape index: {}]   ;;  %s829_s3 = inlined_call_operand.vmem [shape: f32[4,128], index: 3, kind: input, shape index: {}]   ;;  %s830_s4 = inlined_call_operand.vmem [shape: bf16[32,132], index: 4, kind: input, shape index: {}]   ;;  %s831_s5 = inlined_call_operand.vmem [shape: f32[1,132], index: 5, kind: input, shape index: {}]   ;;  %s832_s6 = inlined_call_operand.vmem [shape: bf16[128,32], index: 6, kind: input, shape index: {}]   ;;  %s833_s7 = inlined_call_operand.vmem [shape: f32[1,32], index: 7, kind: input, shape index: {}]   ;;  %s834_s8 = inlined_call_operand.hbm [shape: f32[2,128], index: 8, kind: output, shape index: {}]  }
   0x1   :  { %v608_v0 = vld [vmem:[%s830_s4 + $0x4] ss:$8 sps:$4 sm:$0xff]   ;;  %v610_v1 = vld [vmem:[%s830_s4] ss:$8 sps:$4 sm:$0xff]   ;;  %136 = vmatprep.mubr.bf16.mxu0 %v654_v2  ;;  %607 = vset.pattern.permute.xlu0 %v654_v2  ;;  %v611_v3 = vld [vmem:[%s830_s4 + $0x14] ss:$8 sps:$4 sm:$0xff]  }
   0x2   :  { %104 = vmatprep.subr.bf16.mxu0 %v608_v0  ;;  %v613_v4 = vld [vmem:[%s830_s4 + $0x10] ss:$8 sps:$4 sm:$0xff]   ;;  %v719_v5 = vld [vmem:[%s826_s0] sm:$0xff]  }
   0x3   :  { %105 = vmatpush1.bf16.msra.mxu0 %v610_v1 }
   0x4   :  { %106 = vmatprep.subr.bf16.mxu0 %v611_v3 }
   0x7   :  { %107 = vmatpush1.bf16.msra.mxu0 %v613_v4 }
   0x8   :  { %13 = vsyncpa [#allocation3], 0  ;;  %v202_v6 = vld [vmem:[%s829_s3] sm:$0xf]  ;;  %vm209_vm1 = vcmask 1043456   ;;  %v655_v7 = vmov 0.0   ;;  %v66_v8 = vlaneseq }
   0x9   :  { %572 = vmatprep.subr.msk.mxu0 %vm209_vm1, %v202_v6  ;;  %582 = vmatprep.subr.bf16.mxu1 %v655_v7  ;;  %vm656_vm2 = vmmov 0   ;;  %v738_v11 = vld [vmem:[%s831_s5] sm:$0x3]  ;;  %vm165_vm3 = vcmask 31744   ;;  %vm304_vm6 = vcmask 1041409   ;;  %v616_v61 = vld [vmem:[%s832_s6 + $0x8] sm:$0xff]  }
   0xa   :  { %539 = vmatmul.mubr.msk.bf16.vlgmr.msra.gmra.mrb[0].mxu0 %vm35_vm0, %v719_v5  ;;  %598 = vmatprep.mubr.msk.bf16.mxu1 %vm656_vm2, %v655_v7  ;;  %v732_v9 = vshrl.u32 %v66_v8, 7  ;;  %v540_v37 = vld [vmem:[%s828_s2] ss:$0 sm:$0xff]  ;;  %v541_v38 = vld [vmem:[%s828_s2 + $0x1] ss:$0 sm:$0xff]  ;;  %v617_v62 = vld [vmem:[%s832_s6 + $0x10] sm:$0xff]  }
   0xb   :  { %573 = vmatpush3.msk.msra.mxu0 %vm209_vm1, %v202_v6  ;;  %v615_v60 = vld [vmem:[%s832_s6] sm:$0xff]   ;;  %v618_v63 = vld [vmem:[%s832_s6 + $0x18] sm:$0xff]   ;;  %v620_v1 = vld [vmem:[%s832_s6 + $0x28] sm:$0xff]   ;;  %s657_s14 = smov 32   ;;  %vm517_vm7 = vcmask 523264  }
   0xc   :  { %577 = vmatprep.subr.mxu0 %v655_v7  ;;  %v72_v10 = vsub.s32 1, %v732_v9  ;;  %vm159_vm4 = vcmp.lt.s32.totalorder %v732_v9, %v540_v37  ;;  %vm160_vm5 = vcmp.lt.s32.totalorder %v732_v9, %v541_v38  ;;  %583 = vmatpush3.bf16.msra.mxu1 %v615_v60  ;;  %v619_v0 = vld [vmem:[%s832_s6 + $0x20] sm:$0xff]   ;;  %v621_v2 = vld [vmem:[%s832_s6 + $0x30] sm:$0xff]   ;;  %v622_v3 = vld [vmem:[%s832_s6 + $0x38] sm:$0xff]  }
   0xd   :  { %v542_v39 = vsel %vm159_vm4, 1.0, %v655_v7  ;;  %v543_v41 = vsel %vm160_vm5, 1.0, %v655_v7  ;;  %584 = vmatprep.subr.bf16.mxu1 %v655_v7  ;;  %v50_v4 = vld [vmem:[%s827_s1] sm:$0x3] }
   0xe   :  { %v73_v12 = vrot.slane %v738_v11, %v72_v10  ;;  %53 = vperm.xlu0 %607, %v50_v4  }
  0x10   :  { %585 = vmatpush3.bf16.msra.mxu1 %v616_v61 }
  0x11   :  { %586 = vmatprep.subr.bf16.mxu1 %v655_v7 }
  0x14   :  { %587 = vmatpush3.bf16.msra.mxu1 %v617_v62 }
  0x15   :  { %588 = vmatprep.subr.bf16.mxu1 %v655_v7 }
  0x18   :  { %589 = vmatpush3.bf16.msra.mxu1 %v618_v63 }
  0x19   :  { %590 = vmatprep.subr.bf16.mxu1 %v655_v7 }
  0x1c   :  { %591 = vmatpush3.bf16.msra.mxu1 %v619_v0 }
  0x1d   :  { %592 = vmatprep.subr.bf16.mxu1 %v655_v7 }
  0x20   :  { %593 = vmatpush3.bf16.msra.mxu1 %v620_v1 }
  0x21   :  { %594 = vmatprep.subr.bf16.mxu1 %v655_v7 }
  0x24   :  { %595 = vmatpush3.bf16.msra.mxu1 %v621_v2 }
  0x25   :  { %596 = vmatprep.subr.bf16.mxu1 %v655_v7 }
  0x28   :  { %597 = vmatpush3.bf16.msra.mxu1 %v622_v3 }
  0xdd   :  { %v741_v13 = vpop.f32.mrb[0].mxu0 }
  0xde   :  { %v140_v14 = vpop.f32.mrb[1].mxu0 }
  0xdf   :  { %v141_v15 = vadd.f32 %v140_v14, %v73_v12  ;;  %v743_v16 = vpop.f32.mrb[2].mxu0 }
  0xe0   :  { %v144_v17 = vpop.f32.mrb[3].mxu0 }
  0xe1   :  { %v166_v18 = vsel %vm165_vm3, %v141_v15, -inf  ;;  %v145_v19 = vadd.f32 %v144_v17, %v73_v12 }
  0xe2   :  { %v167_v20 = vrot.slane %v166_v18, 4 }
  0xe3   :  { %v173_v21 = vsel %vm165_vm3, %v145_v19, -inf }
  0xe4   :  { %v168_v22 = vmax.f32 %v166_v18, %v167_v20  ;;  %v174_v23 = vrot.slane %v173_v21, 4 }
  0xe6   :  { %v169_v24 = vrot.slane %v168_v22, 2  ;;  %v175_v25 = vmax.f32 %v173_v21, %v174_v23 }
  0xe8   :  { %v170_v26 = vmax.f32 %v168_v22, %v169_v24  ;;  %v176_v27 = vrot.slane %v175_v25, 2 }
  0xea   :  { %v171_v28 = vrot.slane %v170_v26, 1  ;;  %v177_v29 = vmax.f32 %v175_v25, %v176_v27 }
  0xec   :  { %v172_v30 = vmax.f32 %v170_v26, %v171_v28  ;;  %v178_v31 = vrot.slane %v177_v29, 1 }
  0xee   :  { %v180_v32 = vsub.f32 %v141_v15, %v172_v30  ;;  %v179_v33 = vmax.f32 %v177_v29, %v178_v31 }
  0xf0   :  { %v182_v34 = vmul.f32 1.442695, %v180_v32  ;;  %v181_v35 = vsub.f32 %v145_v19, %v179_v33 }
  0xf2   :  { %624 = vpow2.f32 %v182_v34  ;;  %v184_v36 = vmul.f32 1.442695, %v181_v35 }
  0xf4   :  { %626 = vpow2.f32 %v184_v36 }
  0xfc   :  { %v625_v40 = vpop.eup %624 }
  0xfd   :  { %v186_v42 = vmul.f32 %v625_v40, %v542_v39  ;;  %v549_v40 = vld [vmem:[%s833_s7] ss:$0 sm:$0xff]  ;;  %s658_s7 = smov [#allocation2]  }
  0xfe   :  { %v627_v43 = vpop.eup %626  ;;  %s526_s15 = sshll.u32 %s658_s7, 4  ;;  %s527_s15 = int_to_ptr.vmem [resolvable:$true] %s526_s15 }
  0xff   :  { %v188_v44 = vsel %vm165_vm3, %v186_v42, 0.0  ;;  %574 = vmatprep.mubr.msk.f32.mxu0 %vm165_vm3, %v186_v42  ;;  %v187_v45 = vmul.f32 %v627_v43, %v543_v41  ;;  %s630_s16 = scalar_lea.vmem %s527_s15, 32  ;;  %p635_p1 = scmp.lt.s32.totalorder %s527_s15, %s527_s15 }
 0x100   :  { %v189_v46 = vrot.slane %v188_v44, 4  ;;  %p631_p0 = scmp.ne.s32.totalorder %s527_s15, %s630_s16  ;;  %p636_p2 = scmp.lt.s32.totalorder %s630_s16, %s630_s16 }
 0x101   :  { %v195_v47 = vsel %vm165_vm3, %v187_v45, 0.0  ;;  %575 = vmatmul.mubr.msk.f32.vlgmr.msra.gmra.mrb[4].mxu0 %vm165_vm3, %v187_v45 }
 0x102   :  { %v190_v48 = vadd.f32 %v189_v46, %v188_v44  ;;  %v196_v49 = vrot.slane %v195_v47, 4  ;;  %578 = vmatpush3.msk.msra.mxu0 %vm209_vm1, %v202_v6  ;;  %579 = vmatprep.mubr.msk.f32.mxu0 %vm656_vm2, %v655_v7  ;;  %v68_v6 = vsub.s32 0, %v732_v9  ;;  %v34_v46 = vunpack.c.h.bf16 %v719_v5  ;;  %p637_p3 = por %p636_p2, %p635_p1 }
 0x104   :  { %v191_v50 = vrot.slane %v190_v48, 2  ;;  %v197_v51 = vadd.f32 %v196_v49, %v195_v47  ;;  %v69_v8 = vrot.slane %v738_v11, %v68_v6  ;;  %v33_v47 = vunpack.c.l.bf16 %v719_v5  ;;  %p638_p4 = pnand %p637_p3, %p631_p0 }
 0x106   :  { %v192_v52 = vadd.f32 %v191_v50, %v190_v48  ;;  %v198_v53 = vrot.slane %v197_v51, 2  ;;  %v143_v10 = vadd.f32 %v743_v16, %v69_v8  ;;  %v139_v12 = vadd.f32 %v741_v13, %v69_v8 }
 0x107   :  { %v43_v48 = vsel %vm35_vm0, %v34_v46, 0.0  ;;  %v36_v50 = vsel %vm35_vm0, %v33_v47, 0.0 }
 0x108   :  { %v193_v54 = vrot.slane %v192_v52, 1  ;;  %v199_v55 = vadd.f32 %v198_v53, %v197_v51  ;;  %v44_v49 = vrot.slane %v43_v48, 4  ;;  %v37_v51 = vrot.slane %v36_v50, 4 }
 0x10a   :  { %v200_v56 = vrot.slane %v199_v55, 1  ;;  %v194_v57 = vadd.f32 %v193_v54, %v192_v52  ;;  %v45_v52 = vadd.f32 %v44_v49, %v43_v48  ;;  %v38_v53 = vadd.f32 %v37_v51, %v36_v50 }
 0x10c   :  { %v201_v58 = vadd.f32 %v200_v56, %v199_v55  ;;  %v46_v54 = vrot.slane %v45_v52, 2  ;;  %v39_v55 = vrot.slane %v38_v53, 2 }
 0x10e   :  { %v305_v59 = vsel %vm304_vm6, %v201_v58, %v194_v57  ;;  %v47_v56 = vadd.f32 %v46_v54, %v45_v52  ;;  %v40_v57 = vadd.f32 %v39_v55, %v38_v53 }
 0x10f   :  { %580 = vmatmul.mubr.msk.f32.vlgmr.msra.gmra.mrb[6].mxu0 %vm165_vm3, %v305_v59  ;;  %v54_v59 = vpop.permute.xlu0 %53 }
 0x110   :  { %v48_v58 = vrot.slane %v47_v56, 1  ;;  %v41_v60 = vrot.slane %v40_v57, 1  ;;  %v55_v62 = vrot.slane %v54_v59, 1 }
 0x112   :  { %v49_v61 = vadd.f32 %v48_v58, %v47_v56  ;;  %v42_v63 = vadd.f32 %v41_v60, %v40_v57 }
 0x114   :  { %v59_v0 = vmul.f32 %v55_v62, %v49_v61  ;;  %v58_v5 = vmul.f32 %v54_v59, %v42_v63 }
 0x116   :  { %v509_v1 = vrot.slane %v59_v0, 7 }
 0x118   :  { %v510_v3 = vsel %vm304_vm6, %v509_v1, %v58_v5 }
 0x1d4   :  { %v576_v14 = vpop.f32.mrb[4].mxu0 }
 0x1d5   :  { %v289_v15 = vmul.f32 %v576_v14, %v143_v10  ;;  %v279_v17 = vpop.f32.mrb[5].mxu0 }
 0x1d6   :  { %v288_v18 = vmul.f32 %v279_v17, %v139_v12 }
 0x1d7   :  { %v296_v7 = vrot.slane %v289_v15, 4 }
 0x1d8   :  { %v290_v19 = vrot.slane %v288_v18, 4 }
 0x1d9   :  { %v297_v21 = vadd.f32 %v296_v7, %v289_v15 }
 0x1da   :  { %v291_v20 = vadd.f32 %v290_v19, %v288_v18 }
 0x1db   :  { %v298_v26 = vrot.slane %v297_v21, 2 }
 0x1dc   :  { %v292_v22 = vrot.slane %v291_v20, 2 }
 0x1dd   :  { %v299_v11 = vadd.f32 %v298_v26, %v297_v21 }
 0x1de   :  { %v293_v9 = vadd.f32 %v292_v22, %v291_v20 }
 0x1df   :  { %v300_v16 = vrot.slane %v299_v11, 1 }
 0x1e0   :  { %v294_v27 = vrot.slane %v293_v9, 1 }
 0x1e1   :  { %v301_v29 = vadd.f32 %v300_v16, %v299_v11 }
 0x1e2   :  { %v374_v23 = vpop.f32.mrb[6].mxu0  ;;  %v295_v28 = vadd.f32 %v294_v27, %v293_v9 }
 0x1e3   :  { %v378_v24 = vmax.f32 %v374_v23, 1e-20  ;;  %v581_v25 = vpop.f32.mrb[7].mxu0 }
 0x1e5   :  { %628 = vrcp.f32 %v378_v24 }
 0x1ef   :  { %v629_v13 = vpop.eup %628 }
 0x1f0   :  { %v381_v30 = vrot.slane %v629_v13, 1  ;;  %v384_v31 = vmul.f32 %v629_v13, %v295_v28 }
 0x1f2   :  { %v385_v32 = vmul.f32 %v381_v30, %v301_v29  ;;  %v386_v33 = vpack.c.bf16 %v384_v31, %v384_v31 }
 0x1f4   :  { %v387_v34 = vpack.c.bf16 %v385_v32, %v385_v32  ;;  %v413_v36 = vunpack.c.l.b16 %v386_v33 }
 0x1f6   :  { %v414_v35 = vunpack.c.l.b16 %v387_v34 }
 0x1f8   :  { %v415_v37 = vrot.slane %v414_v35, 7 }
 0x1fa   :  { %v416_v38 = vsel %vm304_vm6, %v415_v37, %v413_v36 }
 0x1fb   :  { %v417_v39 = vpack.c.b16 %v416_v38, %v416_v38 }
 0x1fd   :  { %599 = vmatmul.mubr.bf16.vlgmr.msra.gmra.mrb[0].mxu1 %v417_v39 }
 0x2d0   :  { %v501_v41 = vpop.f32.mrb[0].mxu1 }
 0x2d1   :  { %v502_v42 = vadd.f32 %v549_v40, %v501_v41  ;;  %v600_v43 = vpop.f32.mrb[1].mxu1 }
 0x2d2   :  { %v504_v44 = vpop.f32.mrb[2].mxu1 }
 0x2d3   :  { %513 = vrot.lane.b32.xlu0 %v502_v42, %s657_s14  ;;  %v601_v45 = vpop.f32.mrb[3].mxu1 }
 0x345   :  { %v514_v2 = vpop.permute.xlu0 %513 }
 0x346   :  { %v516_v4 = vsel %vm35_vm0, %v510_v3, %v514_v2 }
 0x347   :  { %v518_v6 = vsel %vm517_vm7, %v516_v4, 0.0 }
 0x348   :  { %519 = vst [vmem:[#allocation2] sm:$0x3] %v518_v6 }
 0x349   :  { %641 = shalt.err (!%p638_p4)
}
 0x34a   :  { %s642_s4 = scalar_lea.hbm %s834_s8, 32 }
 0x34b   :  { %p643_p5 = scmp.ne.s32.totalorder %s834_s8, %s642_s4  ;;  %p646_p6 = scmp.lt.u32.totalorder %s642_s4, %s834_s8 }
 0x34d   :  { %p648_p7 = pnand %p646_p6, %p643_p5 }
 0x34f   :  { %651 = shalt.err (!%p648_p7)
}
 0x350   :  { %529 = dma.vmem_to_hbm [thread:$0]  %s527_s15, 32, %s834_s8, [#allocation3]  }
 0x351   :  { %652 = dma.done.wait [#allocation3], 32  }
 0x352   :  { %653 = vsyncadd [#allocation3], 4294967264 }
 0x353   :  { %533 = vsyncpa [#allocation3], 1 }

// kernel: tpu_custom_call.1
= control target key start
LH: loop header
LB: loop body
LE: loop exit
PB: predicated region body
PF: predicated region fallthrough
CT: control target
= control target key end

     0   :  { %v654_v2 = vmov 0   ;;  %vm35_vm0 = vcmask 261120   ;;  %s826_s0 = inlined_call_operand.vmem [shape: bf16[2,8,32], index: 0, kind: input, shape index: {}]   ;;  %s827_s1 = inlined_call_operand.vmem [shape: f32[2,1], index: 1, kind: input, shape index: {}]   ;;  %s828_s2 = inlined_call_operand.vmem [shape: s32[2,1,4], index: 2, kind: input, shape index: {}]   ;;  %s829_s3 = inlined_call_operand.vmem [shape: f32[4,128], index: 3, kind: input, shape index: {}]   ;;  %s830_s4 = inlined_call_operand.vmem [shape: bf16[32,132], index: 4, kind: input, shape index: {}]   ;;  %s831_s5 = inlined_call_operand.vmem [shape: f32[1,132], index: 5, kind: input, shape index: {}]   ;;  %s832_s6 = inlined_call_operand.vmem [shape: bf16[128,32], index: 6, kind: input, shape index: {}]   ;;  %s833_s7 = inlined_call_operand.vmem [shape: f32[1,32], index: 7, kind: input, shape index: {}]   ;;  %s834_s8 = inlined_call_operand.hbm [shape: f32[2,128], index: 8, kind: output, shape index: {}]  }
   0x1   :  { %v608_v0 = vld [vmem:[%s830_s4 + $0x4] ss:$8 sps:$4 sm:$0xff]   ;;  %v610_v1 = vld [vmem:[%s830_s4] ss:$8 sps:$4 sm:$0xff]   ;;  %136 = vmatprep.mubr.bf16.mxu0 %v654_v2  ;;  %607 = vset.pattern.permute.xlu0 %v654_v2  ;;  %v611_v3 = vld [vmem:[%s830_s4 + $0x14] ss:$8 sps:$4 sm:$0xff]  }
   0x2   :  { %104 = vmatprep.subr.bf16.mxu0 %v608_v0  ;;  %v613_v4 = vld [vmem:[%s830_s4 + $0x10] ss:$8 sps:$4 sm:$0xff]   ;;  %v719_v5 = vld [vmem:[%s826_s0] sm:$0xff]  }
   0x3   :  { %105 = vmatpush1.bf16.msra.mxu0 %v610_v1 }
   0x4   :  { %106 = vmatprep.subr.bf16.mxu0 %v611_v3 }
   0x7   :  { %107 = vmatpush1.bf16.msra.mxu0 %v613_v4 }
   0x8   :  { %13 = vsyncpa [#allocation3], 0  ;;  %v202_v6 = vld [vmem:[%s829_s3] sm:$0xf]  ;;  %vm209_vm1 = vcmask 1043456   ;;  %v655_v7 = vmov 0.0   ;;  %v66_v8 = vlaneseq }
   0x9   :  { %572 = vmatprep.subr.msk.mxu0 %vm209_vm1, %v202_v6  ;;  %582 = vmatprep.subr.bf16.mxu1 %v655_v7  ;;  %vm656_vm2 = vmmov 0   ;;  %v738_v11 = vld [vmem:[%s831_s5] sm:$0x3]  ;;  %vm165_vm3 = vcmask 31744   ;;  %vm304_vm6 = vcmask 1041409   ;;  %v616_v61 = vld [vmem:[%s832_s6 + $0x8] sm:$0xff]  }
   0xa   :  { %539 = vmatmul.mubr.msk.bf16.vlgmr.msra.gmra.mrb[0].mxu0 %vm35_vm0, %v719_v5  ;;  %598 = vmatprep.mubr.msk.bf16.mxu1 %vm656_vm2, %v655_v7  ;;  %v732_v9 = vshrl.u32 %v66_v8, 7  ;;  %v540_v37 = vld [vmem:[%s828_s2] ss:$0 sm:$0xff]  ;;  %v541_v38 = vld [vmem:[%s828_s2 + $0x1] ss:$0 sm:$0xff]  ;;  %v617_v62 = vld [vmem:[%s832_s6 + $0x10] sm:$0xff]  }
   0xb   :  { %573 = vmatpush3.msk.msra.mxu0 %vm209_vm1, %v202_v6  ;;  %v615_v60 = vld [vmem:[%s832_s6] sm:$0xff]   ;;  %v618_v63 = vld [vmem:[%s832_s6 + $0x18] sm:$0xff]   ;;  %v620_v1 = vld [vmem:[%s832_s6 + $0x28] sm:$0xff]   ;;  %s657_s14 = smov 32   ;;  %vm517_vm7 = vcmask 523264  }
   0xc   :  { %577 = vmatprep.subr.mxu0 %v655_v7  ;;  %v72_v10 = vsub.s32 1, %v732_v9  ;;  %vm159_vm4 = vcmp.lt.s32.totalorder %v732_v9, %v540_v37  ;;  %vm160_vm5 = vcmp.lt.s32.totalorder %v732_v9, %v541_v38  ;;  %583 = vmatpush3.bf16.msra.mxu1 %v615_v60  ;;  %v619_v0 = vld [vmem:[%s832_s6 + $0x20] sm:$0xff]   ;;  %v621_v2 = vld [vmem:[%s832_s6 + $0x30] sm:$0xff]   ;;  %v622_v3 = vld [vmem:[%s832_s6 + $0x38] sm:$0xff]  }
   0xd   :  { %v542_v39 = vsel %vm159_vm4, 1.0, %v655_v7  ;;  %v543_v41 = vsel %vm160_vm5, 1.0, %v655_v7  ;;  %584 = vmatprep.subr.bf16.mxu1 %v655_v7  ;;  %v50_v4 = vld [vmem:[%s827_s1] sm:$0x3] }
   0xe   :  { %v73_v12 = vrot.slane %v738_v11, %v72_v10  ;;  %53 = vperm.xlu0 %607, %v50_v4  }
  0x10   :  { %585 = vmatpush3.bf16.msra.mxu1 %v616_v61 }
  0x11   :  { %586 = vmatprep.subr.bf16.mxu1 %v655_v7 }
  0x14   :  { %587 = vmatpush3.bf16.msra.mxu1 %v617_v62 }
  0x15   :  { %588 = vmatprep.subr.bf16.mxu1 %v655_v7 }
  0x18   :  { %589 = vmatpush3.bf16.msra.mxu1 %v618_v63 }
  0x19   :  { %590 = vmatprep.subr.bf16.mxu1 %v655_v7 }
  0x1c   :  { %591 = vmatpush3.bf16.msra.mxu1 %v619_v0 }
  0x1d   :  { %592 = vmatprep.subr.bf16.mxu1 %v655_v7 }
  0x20   :  { %593 = vmatpush3.bf16.msra.mxu1 %v620_v1 }
  0x21   :  { %594 = vmatprep.subr.bf16.mxu1 %v655_v7 }
  0x24   :  { %595 = vmatpush3.bf16.msra.mxu1 %v621_v2 }
  0x25   :  { %596 = vmatprep.subr.bf16.mxu1 %v655_v7 }
  0x28   :  { %597 = vmatpush3.bf16.msra.mxu1 %v622_v3 }
  0xdd   :  { %v741_v13 = vpop.f32.mrb[0].mxu0 }
  0xde   :  { %v140_v14 = vpop.f32.mrb[1].mxu0 }
  0xdf   :  { %v141_v15 = vadd.f32 %v140_v14, %v73_v12  ;;  %v743_v16 = vpop.f32.mrb[2].mxu0 }
  0xe0   :  { %v144_v17 = vpop.f32.mrb[3].mxu0 }
  0xe1   :  { %v166_v18 = vsel %vm165_vm3, %v141_v15, -inf  ;;  %v145_v19 = vadd.f32 %v144_v17, %v73_v12 }
  0xe2   :  { %v167_v20 = vrot.slane %v166_v18, 4 }
  0xe3   :  { %v173_v21 = vsel %vm165_vm3, %v145_v19, -inf }
  0xe4   :  { %v168_v22 = vmax.f32 %v166_v18, %v167_v20  ;;  %v174_v23 = vrot.slane %v173_v21, 4 }
  0xe6   :  { %v169_v24 = vrot.slane %v168_v22, 2  ;;  %v175_v25 = vmax.f32 %v173_v21, %v174_v23 }
  0xe8   :  { %v170_v26 = vmax.f32 %v168_v22, %v169_v24  ;;  %v176_v27 = vrot.slane %v175_v25, 2 }
  0xea   :  { %v171_v28 = vrot.slane %v170_v26, 1  ;;  %v177_v29 = vmax.f32 %v175_v25, %v176_v27 }
  0xec   :  { %v172_v30 = vmax.f32 %v170_v26, %v171_v28  ;;  %v178_v31 = vrot.slane %v177_v29, 1 }
  0xee   :  { %v180_v32 = vsub.f32 %v141_v15, %v172_v30  ;;  %v179_v33 = vmax.f32 %v177_v29, %v178_v31 }
  0xf0   :  { %v182_v34 = vmul.f32 1.442695, %v180_v32  ;;  %v181_v35 = vsub.f32 %v145_v19, %v179_v33 }
  0xf2   :  { %624 = vpow2.f32 %v182_v34  ;;  %v184_v36 = vmul.f32 1.442695, %v181_v35 }
  0xf4   :  { %626 = vpow2.f32 %v184_v36 }
  0xfc   :  { %v625_v40 = vpop.eup %624 }
  0xfd   :  { %v186_v42 = vmul.f32 %v625_v40, %v542_v39  ;;  %v549_v40 = vld [vmem:[%s833_s7] ss:$0 sm:$0xff]  ;;  %s658_s7 = smov [#allocation2]  }
  0xfe   :  { %v627_v43 = vpop.eup %626  ;;  %s526_s15 = sshll.u32 %s658_s7, 4  ;;  %s527_s15 = int_to_ptr.vmem [resolvable:$true] %s526_s15 }
  0xff   :  { %v188_v44 = vsel %vm165_vm3, %v186_v42, 0.0  ;;  %574 = vmatprep.mubr.msk.f32.mxu0 %vm165_vm3, %v186_v42  ;;  %v187_v45 = vmul.f32 %v627_v43, %v543_v41  ;;  %s630_s16 = scalar_lea.vmem %s527_s15, 32  ;;  %p635_p1 = scmp.lt.s32.totalorder %s527_s15, %s527_s15 }
 0x100   :  { %v189_v46 = vrot.slane %v188_v44, 4  ;;  %p631_p0 = scmp.ne.s32.totalorder %s527_s15, %s630_s16  ;;  %p636_p2 = scmp.lt.s32.totalorder %s630_s16, %s630_s16 }
 0x101   :  { %v195_v47 = vsel %vm165_vm3, %v187_v45, 0.0  ;;  %575 = vmatmul.mubr.msk.f32.vlgmr.msra.gmra.mrb[4].mxu0 %vm165_vm3, %v187_v45 }
 0x102   :  { %v190_v48 = vadd.f32 %v189_v46, %v188_v44  ;;  %v196_v49 = vrot.slane %v195_v47, 4  ;;  %578 = vmatpush3.msk.msra.mxu0 %vm209_vm1, %v202_v6  ;;  %579 = vmatprep.mubr.msk.f32.mxu0 %vm656_vm2, %v655_v7  ;;  %v68_v6 = vsub.s32 0, %v732_v9  ;;  %v34_v46 = vunpack.c.h.bf16 %v719_v5  ;;  %p637_p3 = por %p636_p2, %p635_p1 }
 0x104   :  { %v191_v50 = vrot.slane %v190_v48, 2  ;;  %v197_v51 = vadd.f32 %v196_v49, %v195_v47  ;;  %v69_v8 = vrot.slane %v738_v11, %v68_v6  ;;  %v33_v47 = vunpack.c.l.bf16 %v719_v5  ;;  %p638_p4 = pnand %p637_p3, %p631_p0 }
 0x106   :  { %v192_v52 = vadd.f32 %v191_v50, %v190_v48  ;;  %v198_v53 = vrot.slane %v197_v51, 2  ;;  %v143_v10 = vadd.f32 %v743_v16, %v69_v8  ;;  %v139_v12 = vadd.f32 %v741_v13, %v69_v8 }
 0x107   :  { %v43_v48 = vsel %vm35_vm0, %v34_v46, 0.0  ;;  %v36_v50 = vsel %vm35_vm0, %v33_v47, 0.0 }
 0x108   :  { %v193_v54 = vrot.slane %v192_v52, 1  ;;  %v199_v55 = vadd.f32 %v198_v53, %v197_v51  ;;  %v44_v49 = vrot.slane %v43_v48, 4  ;;  %v37_v51 = vrot.slane %v36_v50, 4 }
 0x10a   :  { %v200_v56 = vrot.slane %v199_v55, 1  ;;  %v194_v57 = vadd.f32 %v193_v54, %v192_v52  ;;  %v45_v52 = vadd.f32 %v44_v49, %v43_v48  ;;  %v38_v53 = vadd.f32 %v37_v51, %v36_v50 }
 0x10c   :  { %v201_v58 = vadd.f32 %v200_v56, %v199_v55  ;;  %v46_v54 = vrot.slane %v45_v52, 2  ;;  %v39_v55 = vrot.slane %v38_v53, 2 }
 0x10e   :  { %v305_v59 = vsel %vm304_vm6, %v201_v58, %v194_v57  ;;  %v47_v56 = vadd.f32 %v46_v54, %v45_v52  ;;  %v40_v57 = vadd.f32 %v39_v55, %v38_v53 }
 0x10f   :  { %580 = vmatmul.mubr.msk.f32.vlgmr.msra.gmra.mrb[6].mxu0 %vm165_vm3, %v305_v59  ;;  %v54_v59 = vpop.permute.xlu0 %53 }
 0x110   :  { %v48_v58 = vrot.slane %v47_v56, 1  ;;  %v41_v60 = vrot.slane %v40_v57, 1  ;;  %v55_v62 = vrot.slane %v54_v59, 1 }
 0x112   :  { %v49_v61 = vadd.f32 %v48_v58, %v47_v56  ;;  %v42_v63 = vadd.f32 %v41_v60, %v40_v57 }
 0x114   :  { %v59_v0 = vmul.f32 %v55_v62, %v49_v61  ;;  %v58_v5 = vmul.f32 %v54_v59, %v42_v63 }
 0x116   :  { %v509_v1 = vrot.slane %v59_v0, 7 }
 0x118   :  { %v510_v3 = vsel %vm304_vm6, %v509_v1, %v58_v5 }
 0x1d4   :  { %v576_v14 = vpop.f32.mrb[4].mxu0 }
 0x1d5   :  { %v289_v15 = vmul.f32 %v576_v14, %v143_v10  ;;  %v279_v17 = vpop.f32.mrb[5].mxu0 }
 0x1d6   :  { %v288_v18 = vmul.f32 %v279_v17, %v139_v12 }
 0x1d7   :  { %v296_v7 = vrot.slane %v289_v15, 4 }
 0x1d8   :  { %v290_v19 = vrot.slane %v288_v18, 4 }
 0x1d9   :  { %v297_v21 = vadd.f32 %v296_v7, %v289_v15 }
 0x1da   :  { %v291_v20 = vadd.f32 %v290_v19, %v288_v18 }
 0x1db   :  { %v298_v26 = vrot.slane %v297_v21, 2 }
 0x1dc   :  { %v292_v22 = vrot.slane %v291_v20, 2 }
 0x1dd   :  { %v299_v11 = vadd.f32 %v298_v26, %v297_v21 }
 0x1de   :  { %v293_v9 = vadd.f32 %v292_v22, %v291_v20 }
 0x1df   :  { %v300_v16 = vrot.slane %v299_v11, 1 }
 0x1e0   :  { %v294_v27 = vrot.slane %v293_v9, 1 }
 0x1e1   :  { %v301_v29 = vadd.f32 %v300_v16, %v299_v11 }
 0x1e2   :  { %v374_v23 = vpop.f32.mrb[6].mxu0  ;;  %v295_v28 = vadd.f32 %v294_v27, %v293_v9 }
 0x1e3   :  { %v378_v24 = vmax.f32 %v374_v23, 1e-20  ;;  %v581_v25 = vpop.f32.mrb[7].mxu0 }
 0x1e5   :  { %628 = vrcp.f32 %v378_v24 }
 0x1ef   :  { %v629_v13 = vpop.eup %628 }
 0x1f0   :  { %v381_v30 = vrot.slane %v629_v13, 1  ;;  %v384_v31 = vmul.f32 %v629_v13, %v295_v28 }
 0x1f2   :  { %v385_v32 = vmul.f32 %v381_v30, %v301_v29  ;;  %v386_v33 = vpack.c.bf16 %v384_v31, %v384_v31 }
 0x1f4   :  { %v387_v34 = vpack.c.bf16 %v385_v32, %v385_v32  ;;  %v413_v36 = vunpack.c.l.b16 %v386_v33 }
 0x1f6   :  { %v414_v35 = vunpack.c.l.b16 %v387_v34 }
 0x1f8   :  { %v415_v37 = vrot.slane %v414_v35, 7 }
 0x1fa   :  { %v416_v38 = vsel %vm304_vm6, %v415_v37, %v413_v36 }
 0x1fb   :  { %v417_v39 = vpack.c.b16 %v416_v38, %v416_v38 }
 0x1fd   :  { %599 = vmatmul.mubr.bf16.vlgmr.msra.gmra.mrb[0].mxu1 %v417_v39 }
 0x2d0   :  { %v501_v41 = vpop.f32.mrb[0].mxu1 }
 0x2d1   :  { %v502_v42 = vadd.f32 %v549_v40, %v501_v41  ;;  %v600_v43 = vpop.f32.mrb[1].mxu1 }
 0x2d2   :  { %v504_v44 = vpop.f32.mrb[2].mxu1 }
 0x2d3   :  { %513 = vrot.lane.b32.xlu0 %v502_v42, %s657_s14  ;;  %v601_v45 = vpop.f32.mrb[3].mxu1 }
 0x345   :  { %v514_v2 = vpop.permute.xlu0 %513 }
 0x346   :  { %v516_v4 = vsel %vm35_vm0, %v510_v3, %v514_v2 }
 0x347   :  { %v518_v6 = vsel %vm517_vm7, %v516_v4, 0.0 }
 0x348   :  { %519 = vst [vmem:[#allocation2] sm:$0x3] %v518_v6 }
 0x349   :  { %641 = shalt.err (!%p638_p4)
}
 0x34a   :  { %s642_s4 = scalar_lea.hbm %s834_s8, 32 }
 0x34b   :  { %p643_p5 = scmp.ne.s32.totalorder %s834_s8, %s642_s4  ;;  %p646_p6 = scmp.lt.u32.totalorder %s642_s4, %s834_s8 }
 0x34d   :  { %p648_p7 = pnand %p646_p6, %p643_p5 }
 0x34f   :  { %651 = shalt.err (!%p648_p7)
}
 0x350   :  { %529 = dma.vmem_to_hbm [thread:$0]  %s527_s15, 32, %s834_s8, [#allocation3]  }
 0x351   :  { %652 = dma.done.wait [#allocation3], 32  }
 0x352   :  { %653 = vsyncadd [#allocation3], 4294967264 }
 0x353   :  { %533 = vsyncpa [#allocation3], 1 }

</bundles_post_ra>
